<compile_context>
chip_gen: v6e
topology: v6e:2x2x1
jax: 0.10.0
libtpu: 0.0.40
codegen_flags: <defaults>
</compile_context>

<pallas_src>
from typing import NamedTuple

import jax
import jax.numpy as jnp
from jax.experimental import pallas as pl
from jax.experimental.pallas import tpu as pltpu

ACTION_SIZE = 6
HIDDEN = 512
LANE = 128                 # lane width -> lane-dense padded output (small batch)
MAX_BATCH_TILE = 512       # batch tile cap for large batches
LANE_DENSE_MAX_ROWS = 256  # lane-dense padded output only below this many rows


def _round_up(x, m):
    return ((x + m - 1) // m) * m


def _cdiv(a, b):
    return -(-a // b)


def _mlp_kernel(x_ref, w1_ref, b1_ref, w2_ref, b2_ref, o_ref):
    # Cast x to bf16 in-kernel (hidden under MXU); f32 accumulation throughout.
    x = x_ref[...].astype(jnp.bfloat16)
    h = jnp.dot(x, w1_ref[...], preferred_element_type=jnp.float32)
    h = jnp.maximum(h + b1_ref[...], 0.0)
    y = jnp.dot(h.astype(jnp.bfloat16), w2_ref[...],
                preferred_element_type=jnp.float32)
    o_ref[...] = (y + b2_ref[...]).astype(o_ref.dtype)


class ActionNetParams(NamedTuple):
    w1: jax.Array       # (in, 512)  bf16
    b1: jax.Array       # (1, 512)   f32
    w2: jax.Array       # (512, out) bf16
    b2: jax.Array       # (1, out)   f32
    w2_pad: jax.Array   # (512, 128) bf16  (zero-padded columns)
    b2_pad: jax.Array   # (1, 128)   f32   (zero-padded columns)


def pack_params(w1, b1, w2, b2):
    """One-time packing at init/param-load time (hoisted out of the forward)."""
    out_size = w2.shape[1]
    out_pad = _round_up(max(out_size, LANE), LANE)
    w1_bf = jnp.asarray(w1, jnp.bfloat16)
    w2_bf = jnp.asarray(w2, jnp.bfloat16)
    b1_f = jnp.asarray(b1, jnp.float32).reshape(1, -1)
    b2_f = jnp.asarray(b2, jnp.float32).reshape(1, -1)
    w2_pad = jnp.zeros((w2.shape[0], out_pad), jnp.bfloat16).at[:, :out_size].set(w2_bf)
    b2_pad = jnp.zeros((1, out_pad), jnp.float32).at[:, :out_size].set(b2_f)
    return ActionNetParams(w1_bf, b1_f, w2_bf, b2_f, w2_pad, b2_pad)


@jax.jit
def action_net_forward(x, params: ActionNetParams):
    """Fused Pallas forward: relu(x @ w1 + b1) @ w2 + b2 (f32 in / f32 out)."""
    batch, input_size = x.shape
    out_size = params.w2.shape[1]

    # ---- balanced batch tiling (all static under jit) ------------------------
    # >= 2 grid steps when batch > one sublane group (v7x megacore), tiles
    # balanced so per-tile padding is < 8 rows even for awkward batch sizes.
    n_blocks = max(_cdiv(batch, MAX_BATCH_TILE), 2 if batch > 8 else 1)
    bt = _round_up(_cdiv(batch, n_blocks), 8)
    padded_batch = bt * n_blocks
    if padded_batch != batch:
        x = jnp.zeros((padded_batch, input_size), x.dtype).at[:batch].set(x)

    # Lane-dense (unmasked-store) output only for the small latency-bound path;
    # large batches write the true out_size columns to avoid writeback inflation.
    lane_dense = padded_batch <= LANE_DENSE_MAX_ROWS
    w2_k = params.w2_pad if lane_dense else params.w2
    b2_k = params.b2_pad if lane_dense else params.b2
    out_w = w2_k.shape[1]

    cost = pl.CostEstimate(
        flops=2 * padded_batch * (input_size * HIDDEN + HIDDEN * out_w),
        transcendentals=0,
        bytes_accessed=(x.size * x.dtype.itemsize
                        + params.w1.size * 2 + params.b1.size * 4
                        + w2_k.size * 2 + b2_k.size * 4
                        + padded_batch * out_w * 4),
    )

    out = pl.pallas_call(
        _mlp_kernel,
        out_shape=jax.ShapeDtypeStruct((padded_batch, out_w), jnp.float32),
        grid_spec=pl.GridSpec(
            grid=(n_blocks,),
            in_specs=[
                pl.BlockSpec((bt, input_size), lambda i: (i, 0)),       # x streams
                pl.BlockSpec((input_size, HIDDEN), lambda i: (0, 0)),   # resident
                pl.BlockSpec((1, HIDDEN), lambda i: (0, 0)),            # resident
                pl.BlockSpec((HIDDEN, out_w), lambda i: (0, 0)),        # resident
                pl.BlockSpec((1, out_w), lambda i: (0, 0)),             # resident
            ],
            out_specs=pl.BlockSpec((bt, out_w), lambda i: (i, 0)),
        ),
        compiler_params=pltpu.CompilerParams(
            # Independent batch tiles -> megacore sharding on v7x.
            dimension_semantics=("parallel",),
        ),
        cost_estimate=cost,
    )(x, params.w1, params.b1, w2_k, b2_k)

    return out[:batch, :out_size]


def init_params(key, input_size, output_size=ACTION_SIZE):
    """PyTorch nn.Linear default init: U[-1/sqrt(fan_in), 1/sqrt(fan_in)]."""
    k1, k2, k3, k4 = jax.random.split(key, 4)
    bound1 = 1.0 / jnp.sqrt(input_size)
    bound2 = 1.0 / jnp.sqrt(HIDDEN)
    w1 = jax.random.uniform(k1, (input_size, HIDDEN), jnp.float32, -bound1, bound1)
    b1 = jax.random.uniform(k2, (1, HIDDEN), jnp.float32, -bound1, bound1)
    w2 = jax.random.uniform(k3, (HIDDEN, output_size), jnp.float32, -bound2, bound2)
    b2 = jax.random.uniform(k4, (1, output_size), jnp.float32, -bound2, bound2)
    return w1, b1, w2, b2


if __name__ == "__main__":
    key = jax.random.PRNGKey(0)
    kx, kp = jax.random.split(key)

    input_size = 32
    batch = 8

    w1, b1, w2, b2 = init_params(kp, input_size, ACTION_SIZE)
    params = pack_params(w1, b1, w2, b2)   # hoisted, one-time weight packing

    def ref_fwd(xv):
        return jnp.maximum(xv @ w1 + b1, 0.0) @ w2 + b2

    # Primary small/latency-bound run (single block, lane-dense output).
    x = jax.random.normal(kx, (batch, input_size), jnp.float32)
    out = jax.block_until_ready(action_net_forward(x, params))
    assert out.shape == (batch, ACTION_SIZE)
    assert jnp.allclose(out, ref_fwd(x), atol=3e-2, rtol=3e-2), (
        float(jnp.max(jnp.abs(out - ref_fwd(x)))))

    # Exercise the 2-block (megacore) padded-batch path and the large-batch
    # path that writes the true 6-wide (non-lane-padded) output.
    for b in (20, 300):
        xb = jax.random.normal(jax.random.fold_in(kx, b), (b, input_size),
                               jnp.float32)
        ob = jax.block_until_ready(action_net_forward(xb, params))
        assert ob.shape == (b, ACTION_SIZE)
        assert jnp.allclose(ob, ref_fwd(xb), atol=3e-2, rtol=3e-2), (
            b, float(jnp.max(jnp.abs(ob - ref_fwd(xb)))))

    print("KERNEL_OK")
</pallas_src>

<mosaic_0001>
module attributes {stable_mosaic.version = 11 : i64} {
  func.func @_mlp_kernel(%arg0: i32, %arg1: memref<8x32xf32, #tpu.memory_space<vmem>>, %arg2: memref<32x512xbf16, #tpu.memory_space<vmem>>, %arg3: memref<1x512xf32, #tpu.memory_space<vmem>>, %arg4: memref<512x128xbf16, #tpu.memory_space<vmem>>, %arg5: memref<1x128xf32, #tpu.memory_space<vmem>>, %arg6: memref<8x128xf32, #tpu.memory_space<vmem>>) attributes {dimension_semantics = [#tpu.dimension_semantics<parallel>], iteration_bounds = array<i64: 1>, scalar_prefetch = 0 : i64, scratch_operands = 0 : i64, tpu.core_type = #tpu.core_type<tc>, window_params = [{transform_indices = @transform_0, window_bounds = array<i64: 8, 32>}, {pipeline_mode = #tpu.pipeline_mode<synchronous>, transform_indices = @transform_1, window_bounds = array<i64: 32, 512>}, {pipeline_mode = #tpu.pipeline_mode<synchronous>, transform_indices = @transform_2, window_bounds = array<i64: 1, 512>}, {pipeline_mode = #tpu.pipeline_mode<synchronous>, transform_indices = @transform_3, window_bounds = array<i64: 512, 128>}, {pipeline_mode = #tpu.pipeline_mode<synchronous>, transform_indices = @transform_4, window_bounds = array<i64: 1, 128>}, {transform_indices = @transform_5, window_bounds = array<i64: 8, 128>}]} {
    %c0 = arith.constant 0 : index
    %c0_0 = arith.constant 0 : index
    %0 = vector.load %arg1[%c0, %c0_0] : memref<8x32xf32, #tpu.memory_space<vmem>>, vector<8x32xf32>
    %1 = arith.truncf %0 : vector<8x32xf32> to vector<8x32xbf16>
    %c0_1 = arith.constant 0 : index
    %c0_2 = arith.constant 0 : index
    %2 = vector.load %arg2[%c0_1, %c0_2] : memref<32x512xbf16, #tpu.memory_space<vmem>>, vector<32x512xbf16>
    %cst = arith.constant dense<0.000000e+00> : vector<8x512xf32>
    %3 = tpu.matmul %1, %2, %cst {dimension_numbers = #tpu.dot_dimension_numbers<[1], [0], [0], [1], [0, 0, 1, 1], [], []>} : vector<8x32xbf16>, vector<32x512xbf16>, vector<8x512xf32> -> vector<8x512xf32>
    %c0_3 = arith.constant 0 : index
    %c0_4 = arith.constant 0 : index
    %4 = vector.load %arg3[%c0_3, %c0_4] : memref<1x512xf32, #tpu.memory_space<vmem>>, vector<1x512xf32>
    %5 = vector.broadcast %4 : vector<1x512xf32> to vector<8x512xf32>
    %6 = arith.addf %3, %5 : vector<8x512xf32>
    %cst_5 = arith.constant 0.000000e+00 : f32
    %7 = vector.broadcast %cst_5 : f32 to vector<8x512xf32>
    %8 = arith.maximumf %6, %7 : vector<8x512xf32>
    %9 = arith.truncf %8 : vector<8x512xf32> to vector<8x512xbf16>
    %c0_6 = arith.constant 0 : index
    %c0_7 = arith.constant 0 : index
    %10 = vector.load %arg4[%c0_6, %c0_7] : memref<512x128xbf16, #tpu.memory_space<vmem>>, vector<512x128xbf16>
    %cst_8 = arith.constant dense<0.000000e+00> : vector<8x128xf32>
    %11 = tpu.matmul %9, %10, %cst_8 {dimension_numbers = #tpu.dot_dimension_numbers<[1], [0], [0], [1], [0, 0, 1, 1], [], []>} : vector<8x512xbf16>, vector<512x128xbf16>, vector<8x128xf32> -> vector<8x128xf32>
    %c0_9 = arith.constant 0 : index
    %c0_10 = arith.constant 0 : index
    %12 = vector.load %arg5[%c0_9, %c0_10] : memref<1x128xf32, #tpu.memory_space<vmem>>, vector<1x128xf32>
    %13 = vector.broadcast %12 : vector<1x128xf32> to vector<8x128xf32>
    %14 = arith.addf %11, %13 : vector<8x128xf32>
    %c0_11 = arith.constant 0 : index
    %c0_12 = arith.constant 0 : index
    %15 = vector.load %arg6[%c0_11, %c0_12] : memref<8x128xf32, #tpu.memory_space<vmem>>, vector<8x128xf32>
    tpu.vector_store %arg6[%c0_11, %c0_12], %14 {strides = array<i32>} : memref<8x128xf32, #tpu.memory_space<vmem>>, vector<8x128xf32>,
    return
  }
  func.func @transform_0(%arg0: i32) -> (i32, i32) {
    %c0_i32 = arith.constant 0 : i32
    %c0_i32_0 = arith.constant 0 : i32
    return %arg0, %c0_i32 : i32, i32
  }
  func.func @transform_1(%arg0: i32) -> (i32, i32) {
    %c0_i32 = arith.constant 0 : i32
    %c0_i32_0 = arith.constant 0 : i32
    %c0_i32_1 = arith.constant 0 : i32
    return %c0_i32, %c0_i32_0 : i32, i32
  }
  func.func @transform_2(%arg0: i32) -> (i32, i32) {
    %c0_i32 = arith.constant 0 : i32
    %c0_i32_0 = arith.constant 0 : i32
    %c0_i32_1 = arith.constant 0 : i32
    return %c0_i32, %c0_i32_0 : i32, i32
  }
  func.func @transform_3(%arg0: i32) -> (i32, i32) {
    %c0_i32 = arith.constant 0 : i32
    %c0_i32_0 = arith.constant 0 : i32
    %c0_i32_1 = arith.constant 0 : i32
    return %c0_i32, %c0_i32_0 : i32, i32
  }
  func.func @transform_4(%arg0: i32) -> (i32, i32) {
    %c0_i32 = arith.constant 0 : i32
    %c0_i32_0 = arith.constant 0 : i32
    %c0_i32_1 = arith.constant 0 : i32
    return %c0_i32, %c0_i32_0 : i32, i32
  }
  func.func @transform_5(%arg0: i32) -> (i32, i32) {
    %c0_i32 = arith.constant 0 : i32
    %c0_i32_0 = arith.constant 0 : i32
    return %arg0, %c0_i32 : i32, i32
  }
}

</mosaic_0001>

<bundles_post_ra>
// kernel: action_net_forward.1
= control target key start
LH: loop header
LB: loop body
LE: loop exit
PB: predicated region body
PF: predicated region fallthrough
CT: control target
= control target key end

     0   :  { %10 = vsyncpa [#allocation3], 0  ;;  %s907_s0 = inlined_call_operand.hbm [shape: f32[8,32], index: 0, kind: input, shape index: {}]   ;;  %s908_s1 = inlined_call_operand.hbm [shape: bf16[32,512], index: 1, kind: input, shape index: {}]   ;;  %s909_s2 = inlined_call_operand.hbm [shape: f32[1,512], index: 2, kind: input, shape index: {}]   ;;  %s910_s3 = inlined_call_operand.hbm [shape: bf16[512,128], index: 3, kind: input, shape index: {}]   ;;  %s911_s4 = inlined_call_operand.vmem [shape: f32[1,128], index: 4, kind: input, shape index: {}]   ;;  %s912_s5 = inlined_call_operand.hbm [shape: f32[8,128], index: 5, kind: output, shape index: {}]  }
   0x1   :  { %11 = vsyncpa [#allocation6], 0 }
   0x2   :  { %12 = vsyncpa [#allocation9], 0 }
   0x3   :  { %13 = vsyncpa [#allocation4], 0  ;;  %s849_s18 = smov [#allocation5]  }
   0x4   :  { %s29_s19 = sshll.u32 %s849_s18, 4  ;;  %s30_s19 = int_to_ptr.vmem [resolvable:$true] %s29_s19 }
   0x5   :  { %s749_s20 = scalar_lea.vmem %s30_s19, 1024  ;;  %p754_p1 = scmp.lt.s32.totalorder %s30_s19, %s30_s19 }
   0x6   :  { %p750_p0 = scmp.ne.s32.totalorder %s30_s19, %s749_s20  ;;  %p755_p2 = scmp.lt.s32.totalorder %s749_s20, %s749_s20 }
   0x8   :  { %p756_p3 = por %p755_p2, %p754_p1 }
   0xa   :  { %p757_p4 = pnand %p756_p3, %p750_p0 }
   0xc   :  { %760 = shalt.err (!%p757_p4)
}
   0xd   :  { %s850_s21 = smov 256   ;;  %s851_s22 = smov 16  }
   0xe   :  { %35 = dma.hbm_to_vmem [thread:$0]  %s908_s1, 1024, %s30_s19, [#allocation6], %s850_s21, %s850_s21, %s851_s22  }
   0xf   :  { %s852_s25 = smov [#allocation2]   ;;  %s853_s27 = smov [#allocation7]  }
  0x10   :  { %s20_s26 = sshll.u32 %s852_s25, 4  ;;  %s42_s28 = sshll.u32 %s853_s27, 4  ;;  %s21_s26 = int_to_ptr.vmem [resolvable:$true] %s20_s26  ;;  %s43_s28 = int_to_ptr.vmem [resolvable:$true] %s42_s28 }
  0x11   :  { %s769_s29 = scalar_lea.vmem %s21_s26, 128  ;;  %p774_p6 = scmp.lt.s32.totalorder %s21_s26, %s21_s26 }
  0x12   :  { %p770_p5 = scmp.ne.s32.totalorder %s21_s26, %s769_s29  ;;  %p775_p7 = scmp.lt.s32.totalorder %s769_s29, %s769_s29 }
  0x14   :  { %p776_p8 = por %p775_p7, %p774_p6 }
  0x16   :  { %p777_p9 = pnand %p776_p8, %p770_p5 }
  0x18   :  { %780 = shalt.err (!%p777_p9)
}
  0x19   :  { %23 = dma.hbm_to_vmem [thread:$0]  %s907_s0, 128, %s21_s26, [#allocation3]  }
  0x1a   :  { %s789_s7 = scalar_lea.vmem %s43_s28, 64  ;;  %p794_p11 = scmp.lt.s32.totalorder %s43_s28, %s43_s28 }
  0x1b   :  { %p790_p10 = scmp.ne.s32.totalorder %s43_s28, %s789_s7  ;;  %p795_p12 = scmp.lt.s32.totalorder %s789_s7, %s789_s7 }
  0x1d   :  { %p796_p13 = por %p795_p12, %p794_p11 }
  0x1f   :  { %p797_p0 = pnand %p796_p13, %p790_p10 }
  0x21   :  { %800 = shalt.err (!%p797_p0)
}
  0x22   :  { %45 = dma.hbm_to_vmem [thread:$0]  %s909_s2, 64, %s43_s28, [#allocation6]  }
  0x23   :  { %s854_s9 = smov [#allocation8]  }
  0x24   :  { %s51_s10 = sshll.u32 %s854_s9, 4  ;;  %s52_s10 = int_to_ptr.vmem [resolvable:$true] %s51_s10 }
  0x25   :  { %s809_s11 = scalar_lea.vmem %s52_s10, 4096  ;;  %p814_p2 = scmp.lt.s32.totalorder %s52_s10, %s52_s10 }
  0x26   :  { %p810_p1 = scmp.ne.s32.totalorder %s52_s10, %s809_s11  ;;  %p815_p3 = scmp.lt.s32.totalorder %s809_s11, %s809_s11 }
  0x28   :  { %p816_p4 = por %p815_p3, %p814_p2 }
  0x2a   :  { %p817_p5 = pnand %p816_p4, %p810_p1 }
  0x2c   :  { %820 = shalt.err (!%p817_p5)
}
  0x2d   :  { %s855_s0 = smov 64   ;;  %s856_s12 = smov 4  }
  0x2e   :  { %57 = dma.hbm_to_vmem [thread:$0]  %s910_s3, 4096, %s52_s10, [#allocation9], %s855_s0, %s855_s0, %s856_s12  }
  0x2f   :  { %841 = dma.done.wait [#allocation3], 128  }
  0x30   :  { %842 = vsyncadd [#allocation3], 4294967168 }
  0x31   :  { %843 = dma.done.wait [#allocation6], 1088  }
  0x32   :  { %844 = vsyncadd [#allocation6], 4294966208 }
  0x33   :  { %845 = dma.done.wait [#allocation9], 4096  }
  0x34   :  { %846 = vsyncadd [#allocation9], 4294963200  ;;  %v857_v0 = vmov 0   ;;  %v697_v1 = vld [vmem:[#allocation5 + $0x24] ss:$16 sps:$4 sm:$0xff]   ;;  %v73_v9 = vld [vmem:[#allocation2] sm:$0xff]  ;;  %v85_v43 = vlaneseq }
  0x35   :  { %181 = vmatprep.mubr.bf16.mxu0 %v857_v0  ;;  %222 = vmatprep.mubr.bf16.mxu1 %v857_v0  ;;  %v699_v2 = vld [vmem:[#allocation5 + $0x2c] ss:$16 sps:$4 sm:$0xff]   ;;  %v701_v3 = vld [vmem:[#allocation5 + $0x20] ss:$16 sps:$4 sm:$0xff]   ;;  %v702_v4 = vld [vmem:[#allocation5 + $0x28] ss:$16 sps:$4 sm:$0xff]   ;;  %v74_v11 = vpack.c.bf16 %v73_v9, %v73_v9 }
  0x36   :  { %161 = vmatprep.subr.bf16.mxu0 %v697_v1  ;;  %202 = vmatprep.subr.bf16.mxu1 %v699_v2  ;;  %v703_v5 = vld [vmem:[#allocation5 + $0x4] ss:$16 sps:$4 sm:$0xff]   ;;  %v705_v6 = vld [vmem:[#allocation5 + $0xc] ss:$16 sps:$4 sm:$0xff]   ;;  %v707_v7 = vld [vmem:[#allocation5] ss:$16 sps:$4 sm:$0xff]  }
  0x37   :  { %162 = vmatpush1.bf16.msra.mxu0 %v701_v3  ;;  %203 = vmatpush1.bf16.msra.mxu1 %v702_v4  ;;  %v708_v8 = vld [vmem:[#allocation5 + $0x8] ss:$16 sps:$4 sm:$0xff]   ;;  %v709_v10 = vld [vmem:[#allocation8 + $0x78] sm:$0xff]   ;;  %vm145_vm0 = vcmask 261120   ;;  %v717_v19 = vld [vmem:[#allocation8 + $0x68] sm:$0xff]   ;;  %v86_v44 = vshrl.u32 %v85_v43, 7 }
  0x38   :  { %163 = vmatprep.subr.bf16.mxu0 %v703_v5  ;;  %204 = vmatprep.subr.bf16.mxu1 %v705_v6  ;;  %v710_v12 = vld [vmem:[#allocation8 + $0xf8] sm:$0xff]   ;;  %v713_v15 = vld [vmem:[#allocation8 + $0x70] sm:$0xff]   ;;  %v718_v20 = vld [vmem:[#allocation8 + $0xe8] sm:$0xff]   ;;  %s858_s15 = smov [#allocation10]  }
  0x39   :  { %v711_v13 = vld [vmem:[#allocation8 + $0x38] sm:$0xff]   ;;  %v714_v16 = vld [vmem:[#allocation8 + $0xf0] sm:$0xff]   ;;  %v719_v21 = vld [vmem:[#allocation8 + $0x28] sm:$0xff]   ;;  %v87_v45 = vsub.s32 0, %v86_v44  ;;  %v95_v46 = vsub.s32 2, %v86_v44  ;;  %v91_v48 = vsub.s32 1, %v86_v44 }
  0x3a   :  { %v712_v14 = vld [vmem:[#allocation8 + $0xb8] sm:$0xff]   ;;  %v715_v17 = vld [vmem:[#allocation8 + $0x30] sm:$0xff]   ;;  %v720_v22 = vld [vmem:[#allocation8 + $0xa8] sm:$0xff]   ;;  %v99_v49 = vsub.s32 3, %v86_v44  ;;  %s589_s16 = sshll.u32 %s858_s15, 4  ;;  %s590_s16 = int_to_ptr.vmem [resolvable:$true] %s589_s16 }
  0x3b   :  { %164 = vmatpush1.bf16.msra.mxu0 %v707_v7  ;;  %205 = vmatpush1.bf16.msra.mxu1 %v708_v8  ;;  %v716_v18 = vld [vmem:[#allocation8 + $0xb0] sm:$0xff]   ;;  %v721_v23 = vld [vmem:[#allocation8 + $0x60] sm:$0xff]   ;;  %v725_v27 = vld [vmem:[#allocation8 + $0x58] sm:$0xff]   ;;  %s821_s17 = scalar_lea.vmem %s590_s16, 128  ;;  %p826_p7 = scmp.lt.s32.totalorder %s590_s16, %s590_s16 }
  0x3c   :  { %643 = vmatprep.subr.bf16.mxu0 %v709_v10  ;;  %665 = vmatprep.subr.bf16.mxu1 %v710_v12  ;;  %v722_v24 = vld [vmem:[#allocation8 + $0xe0] sm:$0xff]   ;;  %v726_v28 = vld [vmem:[#allocation8 + $0xd8] sm:$0xff]   ;;  %v729_v31 = vld [vmem:[#allocation8 + $0x50] sm:$0xff]   ;;  %p822_p6 = scmp.ne.s32.totalorder %s590_s16, %s821_s17  ;;  %p827_p8 = scmp.lt.s32.totalorder %s821_s17, %s821_s17 }
  0x3d   :  { %v723_v25 = vld [vmem:[#allocation8 + $0x20] sm:$0xff]   ;;  %v727_v29 = vld [vmem:[#allocation8 + $0x18] sm:$0xff]   ;;  %v730_v32 = vld [vmem:[#allocation8 + $0xd0] sm:$0xff]  }
  0x3e   :  { %608 = vmatmul.mubr.msk.bf16.vlgmr.msra.gmra.mxu0 %vm145_vm0, %v74_v11  ;;  %609 = vmatmul.mubr.msk.bf16.vlgmr.msra.gmra.mxu1 %vm145_vm0, %v74_v11  ;;  %v724_v26 = vld [vmem:[#allocation8 + $0xa0] sm:$0xff]   ;;  %v728_v30 = vld [vmem:[#allocation8 + $0x98] sm:$0xff]   ;;  %v731_v33 = vld [vmem:[#allocation8 + $0x10] sm:$0xff]   ;;  %p828_p9 = por %p827_p8, %p826_p7 }
  0x3f   :  { %644 = vmatpush3.bf16.msra.mxu0 %v711_v13  ;;  %666 = vmatpush3.bf16.msra.mxu1 %v712_v14  ;;  %v732_v34 = vld [vmem:[#allocation8 + $0x90] sm:$0xff]   ;;  %v733_v35 = vld [vmem:[#allocation8 + $0x48] sm:$0xff]   ;;  %v737_v39 = vld [vmem:[#allocation8 + $0x40] sm:$0xff]  }
  0x40   :  { %645 = vmatprep.subr.bf16.mxu0 %v713_v15  ;;  %667 = vmatprep.subr.bf16.mxu1 %v714_v16  ;;  %v734_v36 = vld [vmem:[#allocation8 + $0xc8] sm:$0xff]   ;;  %v738_v40 = vld [vmem:[#allocation8 + $0xc0] sm:$0xff]   ;;  %v83_v47 = vld [vmem:[#allocation7] sm:$0xf]  ;;  %p829_p10 = pnand %p828_p9, %p822_p6 }
  0x41   :  { %v735_v37 = vld [vmem:[#allocation8 + $0x8] sm:$0xff]   ;;  %v739_v41 = vld [vmem:[#allocation8] sm:$0xff]   ;;  %v88_v50 = vrot.slane %v83_v47, %v87_v45  ;;  %v96_v51 = vrot.slane %v83_v47, %v95_v46  ;;  %v92_v52 = vrot.slane %v83_v47, %v91_v48  ;;  %v100_v53 = vrot.slane %v83_v47, %v99_v49  ;;  %v610_v12 = vld [vmem:[%s911_s4] ss:$0 sm:$0xff] }
  0x42   :  { %v736_v38 = vld [vmem:[#allocation8 + $0x88] sm:$0xff]   ;;  %v740_v42 = vld [vmem:[#allocation8 + $0x80] sm:$0xff]  }
  0x43   :  { %646 = vmatpush3.bf16.msra.mxu0 %v715_v17  ;;  %668 = vmatpush3.bf16.msra.mxu1 %v716_v18 }
  0x44   :  { %647 = vmatprep.subr.bf16.mxu0 %v717_v19  ;;  %669 = vmatprep.subr.bf16.mxu1 %v718_v20 }
  0x47   :  { %648 = vmatpush3.bf16.msra.mxu0 %v719_v21  ;;  %670 = vmatpush3.bf16.msra.mxu1 %v720_v22 }
  0x48   :  { %649 = vmatprep.subr.bf16.mxu0 %v721_v23  ;;  %671 = vmatprep.subr.bf16.mxu1 %v722_v24 }
  0x4b   :  { %650 = vmatpush3.bf16.msra.mxu0 %v723_v25  ;;  %672 = vmatpush3.bf16.msra.mxu1 %v724_v26 }
  0x4c   :  { %651 = vmatprep.subr.bf16.mxu0 %v725_v27  ;;  %673 = vmatprep.subr.bf16.mxu1 %v726_v28 }
  0x4f   :  { %652 = vmatpush3.bf16.msra.mxu0 %v727_v29  ;;  %674 = vmatpush3.bf16.msra.mxu1 %v728_v30 }
  0x50   :  { %653 = vmatprep.subr.bf16.mxu0 %v729_v31  ;;  %675 = vmatprep.subr.bf16.mxu1 %v730_v32 }
  0x53   :  { %654 = vmatpush3.bf16.msra.mxu0 %v731_v33  ;;  %676 = vmatpush3.bf16.msra.mxu1 %v732_v34 }
  0x54   :  { %655 = vmatprep.subr.bf16.mxu0 %v733_v35  ;;  %677 = vmatprep.subr.bf16.mxu1 %v734_v36 }
  0x57   :  { %656 = vmatpush3.bf16.msra.mxu0 %v735_v37  ;;  %678 = vmatpush3.bf16.msra.mxu1 %v736_v38 }
  0x58   :  { %657 = vmatprep.subr.bf16.mxu0 %v737_v39  ;;  %679 = vmatprep.subr.bf16.mxu1 %v738_v40 }
  0x5b   :  { %658 = vmatpush3.bf16.msra.mxu0 %v739_v41  ;;  %680 = vmatpush3.bf16.msra.mxu1 %v740_v42 }
  0xfe   :  { %v183_v54 = vpop.f32.mrf.mxu0  ;;  %v224_v55 = vpop.f32.mrf.mxu1 }
  0xff   :  { %v184_v56 = vadd.f32 %v183_v54, %v88_v50  ;;  %v225_v57 = vadd.f32 %v224_v55, %v96_v51 }
 0x100   :  { %v185_v58 = vpop.f32.mrf.mxu0  ;;  %v226_v59 = vpop.f32.mrf.mxu1 }
 0x101   :  { %v233_v60 = vmax.f32 %v225_v57, 0.0  ;;  %v186_v61 = vadd.f32 %v185_v58, %v92_v52  ;;  %v227_v62 = vadd.f32 %v226_v59, %v100_v53  ;;  %v231_v63 = vmax.f32 %v184_v56, 0.0 }
 0x102   :  { %v187_v0 = vpop.f32.mrf.mxu0  ;;  %v228_v1 = vpop.f32.mrf.mxu1 }
 0x103   :  { %v232_v2 = vmax.f32 %v186_v61, 0.0  ;;  %v234_v3 = vmax.f32 %v227_v62, 0.0  ;;  %v237_v4 = vpack.c.bf16 %v233_v60, %v233_v60  ;;  %v235_v9 = vpack.c.bf16 %v231_v63, %v231_v63 }
 0x104   :  { %v188_v5 = vpop.f32.mrf.mxu0  ;;  %v229_v6 = vpop.f32.mrf.mxu1 }
 0x105   :  { %v236_v7 = vpack.c.bf16 %v232_v2, %v232_v2  ;;  %v238_v8 = vpack.c.bf16 %v234_v3, %v234_v3 }
 0x107   :  { %534 = vmatprep.mubr.bf16.mxu0 %v236_v7  ;;  %574 = vmatprep.mubr.bf16.mxu1 %v238_v8 }
 0x108   :  { %535 = vmatmul.mubr.bf16.vlgmr.msra.gmra.mxu0 %v235_v9  ;;  %575 = vmatmul.mubr.bf16.vlgmr.msra.gmra.mxu1 %v237_v4 }
 0x1c8   :  { %v659_v10 = vpop.f32.mrf.mxu0  ;;  %v681_v11 = vpop.f32.mrf.mxu1 }
 0x1ca   :  { %v660_v13 = vpop.f32.mrf.mxu0  ;;  %v682_v14 = vpop.f32.mrf.mxu1 }
 0x1cb   :  { %v661_v15 = vadd.f32 %v660_v13, %v659_v10  ;;  %v683_v19 = vadd.f32 %v682_v14, %v681_v11 }
 0x1cc   :  { %v662_v16 = vpop.f32.mrf.mxu0  ;;  %v684_v17 = vpop.f32.mrf.mxu1 }
 0x1cd   :  { %v537_v18 = vadd.f32 %v661_v15, %v610_v12 }
 0x1ce   :  { %v663_v20 = vpop.f32.mrf.mxu0  ;;  %v685_v21 = vpop.f32.mrf.mxu1 }
 0x1cf   :  { %v577_v22 = vadd.f32 %v683_v19, %v537_v18 }
 0x1d1   :  { %582 = vst [vmem:[#allocation10] sm:$0xff] %v577_v22 }
 0x1d2   :  { %832 = shalt.err (!%p829_p10)
}
 0x1d3   :  { %592 = dma.vmem_to_hbm [thread:$0]  %s590_s16, 128, %s912_s5, [#allocation4]  }
 0x1d4   :  { %847 = dma.done.wait [#allocation4], 128  }
 0x1d5   :  { %848 = vsyncadd [#allocation4], 4294967168 }
 0x1d6   :  { %596 = vsyncpa [#allocation3], 1 }
 0x1d7   :  { %597 = vsyncpa [#allocation6], 1 }
 0x1d8   :  { %598 = vsyncpa [#allocation9], 1 }
 0x1d9   :  { %599 = vsyncpa [#allocation4], 1 }

</bundles_post_ra>
